<compile_context>
chip_gen: v7x
topology: tpu7x:2x2x1
jax: 0.10.0
libtpu: 0.0.40
codegen_flags: <defaults>
</compile_context>

<pallas_src>
import math
from functools import partial

import jax
import jax.numpy as jnp
from jax.experimental import pallas as pl
from jax.experimental.pallas import tpu as pltpu


def _mha_kernel(tgt_ref, mem_ref, wq_ref, wk_ref, wv_ref, wo_ref, bo_ref,
                out_ref, *, num_heads, dk):
    """One grid step: Bt batch elements, all heads, attention + Uo epilogue."""
    Bt, S_t, D = tgt_ref.shape
    _, S_m, _ = mem_ref.shape
    D_out = wo_ref.shape[1]               # lane-padded Uo output width
    in_dtype = tgt_ref.dtype
    scale = 1.0 / math.sqrt(dk)

    # Flatten (batch, seq) -> rows so each projection is one big
    # (Bt*S, D) x (D, H*dk) MXU matmul (instead of H dk-wide dots).
    tgt2d = tgt_ref[...].reshape(Bt * S_t, D)
    mem2d = mem_ref[...].reshape(Bt * S_m, D)

    # Fused Q/K/V projections; fold 1/sqrt(dk) into Q.  Accumulate in f32,
    # keep operands in the input dtype (no blanket f32 upcasts).
    q_all = (jnp.dot(tgt2d, wq_ref[...], preferred_element_type=jnp.float32)
             * scale).astype(in_dtype)                       # (Bt*S_t, H*dk)
    k_all = jnp.dot(mem2d, wk_ref[...],
                    preferred_element_type=jnp.float32).astype(in_dtype)
    v_all = jnp.dot(mem2d, wv_ref[...],
                    preferred_element_type=jnp.float32).astype(in_dtype)

    wo = wo_ref[...]                                         # (H*dk, D_out)

    # Per-head attention; heads accumulate straight into the Uo projection
    # (no lane-axis concatenate, no list of live per-head results).
    acc = jnp.zeros((Bt * S_t, D_out), jnp.float32)
    for h in range(num_heads):                               # static unroll
        sl = slice(h * dk, (h + 1) * dk)
        q_h = q_all[:, sl].reshape(Bt, S_t, dk)
        k_h = k_all[:, sl].reshape(Bt, S_m, dk)
        v_h = v_all[:, sl].reshape(Bt, S_m, dk)

        # scores (Bt, S_t, S_m); numerically-stable softmax over keys.
        s = jnp.einsum("bqd,bkd->bqk", q_h, k_h,
                       preferred_element_type=jnp.float32)
        s = s - jnp.max(s, axis=-1, keepdims=True)
        e = jnp.exp(s)
        p = e * pl.reciprocal(jnp.sum(e, axis=-1, keepdims=True), approx=True)
        # TODO(synk): dropout(p=0.0) is identity; nonzero-p dropout and the
        # tgt_mask / key-padding-mask path are omitted (defaults in the spec).

        o_h = jnp.einsum("bqk,bkd->bqd", p.astype(in_dtype), v_h,
                         preferred_element_type=jnp.float32)  # (Bt, S_t, dk)
        acc = acc + jnp.dot(o_h.reshape(Bt * S_t, dk).astype(wo.dtype),
                            wo[sl, :],
                            preferred_element_type=jnp.float32)

    out = acc + bo_ref[...].astype(jnp.float32)               # (Bt*S_t, D_out)
    out_ref[...] = out.reshape(Bt, S_t, D_out).astype(out_ref.dtype)


def _choose_batch_tile(B, S_t, S_m):
    """Largest divisor of B keeping <=512 rows per tile, while keeping at
    least 2 grid steps when possible (so both v7x TensorCores get work)."""
    max_rows = 512
    best = 1
    for cand in range(1, B + 1):
        if B % cand:
            continue
        if cand * max(S_t, S_m, 1) > max_rows:
            continue
        if B >= 2 and B // cand < 2:
            continue
        best = cand
    return best


def naive_mha_pallas(tgt, memory, wq, wk, wv, wo, bo):
    """
    tgt:     (B, S_t, D)
    memory:  (B, S_m, D)
    wq/wk/wv:(H, D, dk)  per-head projections, pre-transposed (x @ W), no bias
    wo:      (D, D)      output projection, pre-transposed
    bo:      (1, D)      output projection bias
    """
    B, S_t, D = tgt.shape
    _, S_m, _ = memory.shape
    H, _, dk = wq.shape

    # Fuse the per-head projection weights wrapper-side: (H, D, dk)->(D, H*dk).
    # Head h occupies feature columns [h*dk, (h+1)*dk) — same order as the
    # PyTorch concat.
    wq_f = jnp.transpose(wq, (1, 0, 2)).reshape(D, H * dk)
    wk_f = jnp.transpose(wk, (1, 0, 2)).reshape(D, H * dk)
    wv_f = jnp.transpose(wv, (1, 0, 2)).reshape(D, H * dk)

    # Lane-dense output: pad Uo's output dim (and bias) to a multiple of 128
    # so kernel stores are full-width vst rather than masked partial stores.
    D_out = ((D + 127) // 128) * 128
    if D_out != D:
        wo_p = jnp.pad(wo, ((0, 0), (0, D_out - D)))
        bo_p = jnp.pad(bo, ((0, 0), (0, D_out - D)))
    else:
        wo_p, bo_p = wo, bo

    Bt = _choose_batch_tile(B, S_t, S_m)

    kern = partial(_mha_kernel, num_heads=H, dk=dk)
    full2 = lambda b: (0, 0)

    out = pl.pallas_call(
        kern,
        out_shape=jax.ShapeDtypeStruct((B, S_t, D_out), tgt.dtype),
        grid_spec=pltpu.PrefetchScalarGridSpec(
            num_scalar_prefetch=0,
            grid=(B // Bt,),
            in_specs=[
                pl.BlockSpec((Bt, S_t, D), lambda b: (b, 0, 0)),   # tgt
                pl.BlockSpec((Bt, S_m, D), lambda b: (b, 0, 0)),   # memory
                pl.BlockSpec((D, H * dk), full2),                  # Wq fused
                pl.BlockSpec((D, H * dk), full2),                  # Wk fused
                pl.BlockSpec((D, H * dk), full2),                  # Wv fused
                pl.BlockSpec((D, D_out), full2),                   # Wo (padded)
                pl.BlockSpec((1, D_out), full2),                   # bo (padded)
            ],
            out_specs=pl.BlockSpec((Bt, S_t, D_out), lambda b: (b, 0, 0)),
        ),
        compiler_params=pltpu.CompilerParams(
            dimension_semantics=("parallel",)),
    )(tgt, memory, wq_f, wk_f, wv_f, wo_p, bo_p)

    return out[..., :D] if D_out != D else out


def naive_mha_ref(tgt, memory, wq, wk, wv, wo, bo):
    """Pure-JAX reference mirroring the PyTorch forward."""
    dk = wq.shape[-1]
    scale = 1.0 / math.sqrt(dk)
    q = jnp.einsum("bsd,hdk->bhsk", tgt, wq)
    k = jnp.einsum("bsd,hdk->bhsk", memory, wk)
    v = jnp.einsum("bsd,hdk->bhsk", memory, wv)
    a = jax.nn.softmax(jnp.einsum("bhqk,bhmk->bhqm", q, k) * scale, axis=-1)
    o = jnp.einsum("bhqm,bhmk->bhqk", a, v)                    # (B,H,S_t,dk)
    o = jnp.transpose(o, (0, 2, 1, 3)).reshape(tgt.shape[0], tgt.shape[1], -1)
    return o @ wo + bo


if __name__ == "__main__":
    B, S_t, S_m, D, H = 2, 8, 8, 32, 4
    dk = D // H

    key = jax.random.PRNGKey(0)
    ks = jax.random.split(key, 7)
    tgt = jax.random.normal(ks[0], (B, S_t, D), jnp.float32)
    memory = jax.random.normal(ks[1], (B, S_m, D), jnp.float32)
    # Deterministic synthetic parameters (per-head Uq/Uk/Uv without bias,
    # Uo with bias), stored pre-transposed for the kernel.
    wq = jax.random.normal(ks[2], (H, D, dk), jnp.float32) * (1.0 / math.sqrt(D))
    wk = jax.random.normal(ks[3], (H, D, dk), jnp.float32) * (1.0 / math.sqrt(D))
    wv = jax.random.normal(ks[4], (H, D, dk), jnp.float32) * (1.0 / math.sqrt(D))
    wo = jax.random.normal(ks[5], (D, D), jnp.float32) * (1.0 / math.sqrt(D))
    bo = jax.random.normal(ks[6], (1, D), jnp.float32) * 0.01

    out = jax.block_until_ready(naive_mha_pallas(tgt, memory, wq, wk, wv, wo, bo))
    ref = naive_mha_ref(tgt, memory, wq, wk, wv, wo, bo)

    assert out.shape == (B, S_t, D)
    # Tolerance loosened slightly vs the pure-f32 path: the kernel uses the
    # EUP approximate reciprocal for the softmax denominator.
    assert jnp.allclose(out, ref, atol=1e-2, rtol=1e-2), "mismatch vs JAX reference"
    print("KERNEL_OK")
</pallas_src>

<mosaic_0001>
module attributes {stable_mosaic.version = 11 : i64} {
  func.func @_mha_kernel(%arg0: i32, %arg1: memref<1x8x32xf32, #tpu.memory_space<vmem>>, %arg2: memref<1x8x32xf32, #tpu.memory_space<vmem>>, %arg3: memref<32x32xf32, #tpu.memory_space<vmem>>, %arg4: memref<32x32xf32, #tpu.memory_space<vmem>>, %arg5: memref<32x32xf32, #tpu.memory_space<vmem>>, %arg6: memref<32x128xf32, #tpu.memory_space<vmem>>, %arg7: memref<1x128xf32, #tpu.memory_space<vmem>>, %arg8: memref<1x8x128xf32, #tpu.memory_space<vmem>>) attributes {dimension_semantics = [#tpu.dimension_semantics<parallel>], iteration_bounds = array<i64: 2>, scalar_prefetch = 0 : i64, scratch_operands = 0 : i64, tpu.core_type = #tpu.core_type<tc>, window_params = [{transform_indices = @transform_0, window_bounds = array<i64: 1, 8, 32>}, {transform_indices = @transform_1, window_bounds = array<i64: 1, 8, 32>}, {pipeline_mode = #tpu.pipeline_mode<synchronous>, transform_indices = @transform_2, window_bounds = array<i64: 32, 32>}, {pipeline_mode = #tpu.pipeline_mode<synchronous>, transform_indices = @transform_3, window_bounds = array<i64: 32, 32>}, {pipeline_mode = #tpu.pipeline_mode<synchronous>, transform_indices = @transform_4, window_bounds = array<i64: 32, 32>}, {pipeline_mode = #tpu.pipeline_mode<synchronous>, transform_indices = @transform_5, window_bounds = array<i64: 32, 128>}, {pipeline_mode = #tpu.pipeline_mode<synchronous>, transform_indices = @transform_6, window_bounds = array<i64: 1, 128>}, {transform_indices = @transform_7, window_bounds = array<i64: 1, 8, 128>}]} {
    %c0 = arith.constant 0 : index
    %c0_0 = arith.constant 0 : index
    %c0_1 = arith.constant 0 : index
    %0 = vector.load %arg1[%c0, %c0_0, %c0_1] : memref<1x8x32xf32, #tpu.memory_space<vmem>>, vector<1x8x32xf32>
    %1 = vector.shape_cast %0 : vector<1x8x32xf32> to vector<8x32xf32>
    %c0_2 = arith.constant 0 : index
    %c0_3 = arith.constant 0 : index
    %c0_4 = arith.constant 0 : index
    %2 = vector.load %arg2[%c0_2, %c0_3, %c0_4] : memref<1x8x32xf32, #tpu.memory_space<vmem>>, vector<1x8x32xf32>
    %3 = vector.shape_cast %2 : vector<1x8x32xf32> to vector<8x32xf32>
    %c0_5 = arith.constant 0 : index
    %c0_6 = arith.constant 0 : index
    %4 = vector.load %arg3[%c0_5, %c0_6] : memref<32x32xf32, #tpu.memory_space<vmem>>, vector<32x32xf32>
    %cst = arith.constant dense<0.000000e+00> : vector<8x32xf32>
    %5 = tpu.matmul %1, %4, %cst {dimension_numbers = #tpu.dot_dimension_numbers<[1], [0], [0], [1], [0, 0, 1, 1], [], []>} : vector<8x32xf32>, vector<32x32xf32>, vector<8x32xf32> -> vector<8x32xf32>
    %cst_7 = arith.constant 0.353553385 : f32
    %6 = vector.broadcast %cst_7 : f32 to vector<8x32xf32>
    %7 = arith.mulf %5, %6 : vector<8x32xf32>
    %c0_8 = arith.constant 0 : index
    %c0_9 = arith.constant 0 : index
    %8 = vector.load %arg4[%c0_8, %c0_9] : memref<32x32xf32, #tpu.memory_space<vmem>>, vector<32x32xf32>
    %cst_10 = arith.constant dense<0.000000e+00> : vector<8x32xf32>
    %9 = tpu.matmul %3, %8, %cst_10 {dimension_numbers = #tpu.dot_dimension_numbers<[1], [0], [0], [1], [0, 0, 1, 1], [], []>} : vector<8x32xf32>, vector<32x32xf32>, vector<8x32xf32> -> vector<8x32xf32>
    %c0_11 = arith.constant 0 : index
    %c0_12 = arith.constant 0 : index
    %10 = vector.load %arg5[%c0_11, %c0_12] : memref<32x32xf32, #tpu.memory_space<vmem>>, vector<32x32xf32>
    %cst_13 = arith.constant dense<0.000000e+00> : vector<8x32xf32>
    %11 = tpu.matmul %3, %10, %cst_13 {dimension_numbers = #tpu.dot_dimension_numbers<[1], [0], [0], [1], [0, 0, 1, 1], [], []>} : vector<8x32xf32>, vector<32x32xf32>, vector<8x32xf32> -> vector<8x32xf32>
    %c0_14 = arith.constant 0 : index
    %c0_15 = arith.constant 0 : index
    %12 = vector.load %arg6[%c0_14, %c0_15] : memref<32x128xf32, #tpu.memory_space<vmem>>, vector<32x128xf32>
    %cst_16 = arith.constant 0.000000e+00 : f32
    %13 = vector.broadcast %cst_16 : f32 to vector<8x128xf32>
    %14 = vector.extract_strided_slice %7 {offsets = [0, 0], sizes = [8, 8], strides = [1, 1]} : vector<8x32xf32> to vector<8x8xf32>
    %15 = vector.shape_cast %14 : vector<8x8xf32> to vector<1x8x8xf32>
    %16 = vector.extract_strided_slice %9 {offsets = [0, 0], sizes = [8, 8], strides = [1, 1]} : vector<8x32xf32> to vector<8x8xf32>
    %17 = vector.shape_cast %16 : vector<8x8xf32> to vector<1x8x8xf32>
    %18 = vector.extract_strided_slice %11 {offsets = [0, 0], sizes = [8, 8], strides = [1, 1]} : vector<8x32xf32> to vector<8x8xf32>
    %19 = vector.shape_cast %18 : vector<8x8xf32> to vector<1x8x8xf32>
    "tpu.trace_start"() <{level = 10 : i32, message = "bqd,bkd->bqk"}> : () -> ()
    %cst_17 = arith.constant dense<0.000000e+00> : vector<1x8x8xf32>
    %20 = tpu.matmul %15, %17, %cst_17 {dimension_numbers = #tpu.dot_dimension_numbers<[2], [2], [1], [1], [0, 0, 0, 1, 1, 1], [0], [0]>} : vector<1x8x8xf32>, vector<1x8x8xf32>, vector<1x8x8xf32> -> vector<1x8x8xf32>
    "tpu.trace_stop"() : () -> ()
    %cst_18 = arith.constant dense<0xFF800000> : vector<1x8xf32>
    %21 = vector.multi_reduction <maximumf>, %20, %cst_18 [2] : vector<1x8x8xf32> to vector<1x8xf32>
    %22 = vector.shape_cast %21 : vector<1x8xf32> to vector<1x8x1xf32>
    %23 = vector.broadcast %22 : vector<1x8x1xf32> to vector<1x8x8xf32>
    %24 = arith.subf %20, %23 : vector<1x8x8xf32>
    %25 = math.exp %24 : vector<1x8x8xf32>
    %cst_19 = arith.constant dense<0.000000e+00> : vector<1x8xf32>
    %26 = vector.multi_reduction <add>, %25, %cst_19 [2] : vector<1x8x8xf32> to vector<1x8xf32>
    %27 = vector.shape_cast %26 : vector<1x8xf32> to vector<1x8x1xf32>
    %28 = tpu.reciprocal %27 {approx = true} : vector<1x8x1xf32> -> vector<1x8x1xf32>
    %29 = vector.broadcast %28 : vector<1x8x1xf32> to vector<1x8x8xf32>
    %30 = arith.mulf %25, %29 : vector<1x8x8xf32>
    "tpu.trace_start"() <{level = 10 : i32, message = "bqk,bkd->bqd"}> : () -> ()
    %cst_20 = arith.constant dense<0.000000e+00> : vector<1x8x8xf32>
    %31 = tpu.matmul %30, %19, %cst_20 {dimension_numbers = #tpu.dot_dimension_numbers<[2], [1], [1], [2], [0, 0, 0, 1, 1, 2], [0], [0]>} : vector<1x8x8xf32>, vector<1x8x8xf32>, vector<1x8x8xf32> -> vector<1x8x8xf32>
    "tpu.trace_stop"() : () -> ()
    %32 = vector.shape_cast %31 : vector<1x8x8xf32> to vector<8x8xf32>
    %33 = vector.extract_strided_slice %12 {offsets = [0, 0], sizes = [8, 128], strides = [1, 1]} : vector<32x128xf32> to vector<8x128xf32>
    %cst_21 = arith.constant dense<0.000000e+00> : vector<8x128xf32>
    %34 = tpu.matmul %32, %33, %cst_21 {dimension_numbers = #tpu.dot_dimension_numbers<[1], [0], [0], [1], [0, 0, 1, 1], [], []>} : vector<8x8xf32>, vector<8x128xf32>, vector<8x128xf32> -> vector<8x128xf32>
    %35 = arith.addf %13, %34 : vector<8x128xf32>
    %36 = vector.extract_strided_slice %7 {offsets = [0, 8], sizes = [8, 8], strides = [1, 1]} : vector<8x32xf32> to vector<8x8xf32>
    %37 = vector.shape_cast %36 : vector<8x8xf32> to vector<1x8x8xf32>
    %38 = vector.extract_strided_slice %9 {offsets = [0, 8], sizes = [8, 8], strides = [1, 1]} : vector<8x32xf32> to vector<8x8xf32>
    %39 = vector.shape_cast %38 : vector<8x8xf32> to vector<1x8x8xf32>
    %40 = vector.extract_strided_slice %11 {offsets = [0, 8], sizes = [8, 8], strides = [1, 1]} : vector<8x32xf32> to vector<8x8xf32>
    %41 = vector.shape_cast %40 : vector<8x8xf32> to vector<1x8x8xf32>
    "tpu.trace_start"() <{level = 10 : i32, message = "bqd,bkd->bqk"}> : () -> ()
    %cst_22 = arith.constant dense<0.000000e+00> : vector<1x8x8xf32>
    %42 = tpu.matmul %37, %39, %cst_22 {dimension_numbers = #tpu.dot_dimension_numbers<[2], [2], [1], [1], [0, 0, 0, 1, 1, 1], [0], [0]>} : vector<1x8x8xf32>, vector<1x8x8xf32>, vector<1x8x8xf32> -> vector<1x8x8xf32>
    "tpu.trace_stop"() : () -> ()
    %cst_23 = arith.constant dense<0xFF800000> : vector<1x8xf32>
    %43 = vector.multi_reduction <maximumf>, %42, %cst_23 [2] : vector<1x8x8xf32> to vector<1x8xf32>
    %44 = vector.shape_cast %43 : vector<1x8xf32> to vector<1x8x1xf32>
    %45 = vector.broadcast %44 : vector<1x8x1xf32> to vector<1x8x8xf32>
    %46 = arith.subf %42, %45 : vector<1x8x8xf32>
    %47 = math.exp %46 : vector<1x8x8xf32>
    %cst_24 = arith.constant dense<0.000000e+00> : vector<1x8xf32>
    %48 = vector.multi_reduction <add>, %47, %cst_24 [2] : vector<1x8x8xf32> to vector<1x8xf32>
    %49 = vector.shape_cast %48 : vector<1x8xf32> to vector<1x8x1xf32>
    %50 = tpu.reciprocal %49 {approx = true} : vector<1x8x1xf32> -> vector<1x8x1xf32>
    %51 = vector.broadcast %50 : vector<1x8x1xf32> to vector<1x8x8xf32>
    %52 = arith.mulf %47, %51 : vector<1x8x8xf32>
    "tpu.trace_start"() <{level = 10 : i32, message = "bqk,bkd->bqd"}> : () -> ()
    %cst_25 = arith.constant dense<0.000000e+00> : vector<1x8x8xf32>
    %53 = tpu.matmul %52, %41, %cst_25 {dimension_numbers = #tpu.dot_dimension_numbers<[2], [1], [1], [2], [0, 0, 0, 1, 1, 2], [0], [0]>} : vector<1x8x8xf32>, vector<1x8x8xf32>, vector<1x8x8xf32> -> vector<1x8x8xf32>
    "tpu.trace_stop"() : () -> ()
    %54 = vector.shape_cast %53 : vector<1x8x8xf32> to vector<8x8xf32>
    %55 = vector.extract_strided_slice %12 {offsets = [8, 0], sizes = [8, 128], strides = [1, 1]} : vector<32x128xf32> to vector<8x128xf32>
    %cst_26 = arith.constant dense<0.000000e+00> : vector<8x128xf32>
    %56 = tpu.matmul %54, %55, %cst_26 {dimension_numbers = #tpu.dot_dimension_numbers<[1], [0], [0], [1], [0, 0, 1, 1], [], []>} : vector<8x8xf32>, vector<8x128xf32>, vector<8x128xf32> -> vector<8x128xf32>
    %57 = arith.addf %35, %56 : vector<8x128xf32>
    %58 = vector.extract_strided_slice %7 {offsets = [0, 16], sizes = [8, 8], strides = [1, 1]} : vector<8x32xf32> to vector<8x8xf32>
    %59 = vector.shape_cast %58 : vector<8x8xf32> to vector<1x8x8xf32>
    %60 = vector.extract_strided_slice %9 {offsets = [0, 16], sizes = [8, 8], strides = [1, 1]} : vector<8x32xf32> to vector<8x8xf32>
    %61 = vector.shape_cast %60 : vector<8x8xf32> to vector<1x8x8xf32>
    %62 = vector.extract_strided_slice %11 {offsets = [0, 16], sizes = [8, 8], strides = [1, 1]} : vector<8x32xf32> to vector<8x8xf32>
    %63 = vector.shape_cast %62 : vector<8x8xf32> to vector<1x8x8xf32>
    "tpu.trace_start"() <{level = 10 : i32, message = "bqd,bkd->bqk"}> : () -> ()
    %cst_27 = arith.constant dense<0.000000e+00> : vector<1x8x8xf32>
    %64 = tpu.matmul %59, %61, %cst_27 {dimension_numbers = #tpu.dot_dimension_numbers<[2], [2], [1], [1], [0, 0, 0, 1, 1, 1], [0], [0]>} : vector<1x8x8xf32>, vector<1x8x8xf32>, vector<1x8x8xf32> -> vector<1x8x8xf32>
    "tpu.trace_stop"() : () -> ()
    %cst_28 = arith.constant dense<0xFF800000> : vector<1x8xf32>
    %65 = vector.multi_reduction <maximumf>, %64, %cst_28 [2] : vector<1x8x8xf32> to vector<1x8xf32>
    %66 = vector.shape_cast %65 : vector<1x8xf32> to vector<1x8x1xf32>
    %67 = vector.broadcast %66 : vector<1x8x1xf32> to vector<1x8x8xf32>
    %68 = arith.subf %64, %67 : vector<1x8x8xf32>
    %69 = math.exp %68 : vector<1x8x8xf32>
    %cst_29 = arith.constant dense<0.000000e+00> : vector<1x8xf32>
    %70 = vector.multi_reduction <add>, %69, %cst_29 [2] : vector<1x8x8xf32> to vector<1x8xf32>
    %71 = vector.shape_cast %70 : vector<1x8xf32> to vector<1x8x1xf32>
    %72 = tpu.reciprocal %71 {approx = true} : vector<1x8x1xf32> -> vector<1x8x1xf32>
    %73 = vector.broadcast %72 : vector<1x8x1xf32> to vector<1x8x8xf32>
    %74 = arith.mulf %69, %73 : vector<1x8x8xf32>
    "tpu.trace_start"() <{level = 10 : i32, message = "bqk,bkd->bqd"}> : () -> ()
    %cst_30 = arith.constant dense<0.000000e+00> : vector<1x8x8xf32>
    %75 = tpu.matmul %74, %63, %cst_30 {dimension_numbers = #tpu.dot_dimension_numbers<[2], [1], [1], [2], [0, 0, 0, 1, 1, 2], [0], [0]>} : vector<1x8x8xf32>, vector<1x8x8xf32>, vector<1x8x8xf32> -> vector<1x8x8xf32>
    "tpu.trace_stop"() : () -> ()
    %76 = vector.shape_cast %75 : vector<1x8x8xf32> to vector<8x8xf32>
    %77 = vector.extract_strided_slice %12 {offsets = [16, 0], sizes = [8, 128], strides = [1, 1]} : vector<32x128xf32> to vector<8x128xf32>
    %cst_31 = arith.constant dense<0.000000e+00> : vector<8x128xf32>
    %78 = tpu.matmul %76, %77, %cst_31 {dimension_numbers = #tpu.dot_dimension_numbers<[1], [0], [0], [1], [0, 0, 1, 1], [], []>} : vector<8x8xf32>, vector<8x128xf32>, vector<8x128xf32> -> vector<8x128xf32>
    %79 = arith.addf %57, %78 : vector<8x128xf32>
    %80 = vector.extract_strided_slice %7 {offsets = [0, 24], sizes = [8, 8], strides = [1, 1]} : vector<8x32xf32> to vector<8x8xf32>
    %81 = vector.shape_cast %80 : vector<8x8xf32> to vector<1x8x8xf32>
    %82 = vector.extract_strided_slice %9 {offsets = [0, 24], sizes = [8, 8], strides = [1, 1]} : vector<8x32xf32> to vector<8x8xf32>
    %83 = vector.shape_cast %82 : vector<8x8xf32> to vector<1x8x8xf32>
    %84 = vector.extract_strided_slice %11 {offsets = [0, 24], sizes = [8, 8], strides = [1, 1]} : vector<8x32xf32> to vector<8x8xf32>
    %85 = vector.shape_cast %84 : vector<8x8xf32> to vector<1x8x8xf32>
    "tpu.trace_start"() <{level = 10 : i32, message = "bqd,bkd->bqk"}> : () -> ()
    %cst_32 = arith.constant dense<0.000000e+00> : vector<1x8x8xf32>
    %86 = tpu.matmul %81, %83, %cst_32 {dimension_numbers = #tpu.dot_dimension_numbers<[2], [2], [1], [1], [0, 0, 0, 1, 1, 1], [0], [0]>} : vector<1x8x8xf32>, vector<1x8x8xf32>, vector<1x8x8xf32> -> vector<1x8x8xf32>
    "tpu.trace_stop"() : () -> ()
    %cst_33 = arith.constant dense<0xFF800000> : vector<1x8xf32>
    %87 = vector.multi_reduction <maximumf>, %86, %cst_33 [2] : vector<1x8x8xf32> to vector<1x8xf32>
    %88 = vector.shape_cast %87 : vector<1x8xf32> to vector<1x8x1xf32>
    %89 = vector.broadcast %88 : vector<1x8x1xf32> to vector<1x8x8xf32>
    %90 = arith.subf %86, %89 : vector<1x8x8xf32>
    %91 = math.exp %90 : vector<1x8x8xf32>
    %cst_34 = arith.constant dense<0.000000e+00> : vector<1x8xf32>
    %92 = vector.multi_reduction <add>, %91, %cst_34 [2] : vector<1x8x8xf32> to vector<1x8xf32>
    %93 = vector.shape_cast %92 : vector<1x8xf32> to vector<1x8x1xf32>
    %94 = tpu.reciprocal %93 {approx = true} : vector<1x8x1xf32> -> vector<1x8x1xf32>
    %95 = vector.broadcast %94 : vector<1x8x1xf32> to vector<1x8x8xf32>
    %96 = arith.mulf %91, %95 : vector<1x8x8xf32>
    "tpu.trace_start"() <{level = 10 : i32, message = "bqk,bkd->bqd"}> : () -> ()
    %cst_35 = arith.constant dense<0.000000e+00> : vector<1x8x8xf32>
    %97 = tpu.matmul %96, %85, %cst_35 {dimension_numbers = #tpu.dot_dimension_numbers<[2], [1], [1], [2], [0, 0, 0, 1, 1, 2], [0], [0]>} : vector<1x8x8xf32>, vector<1x8x8xf32>, vector<1x8x8xf32> -> vector<1x8x8xf32>
    "tpu.trace_stop"() : () -> ()
    %98 = vector.shape_cast %97 : vector<1x8x8xf32> to vector<8x8xf32>
    %99 = vector.extract_strided_slice %12 {offsets = [24, 0], sizes = [8, 128], strides = [1, 1]} : vector<32x128xf32> to vector<8x128xf32>
    %cst_36 = arith.constant dense<0.000000e+00> : vector<8x128xf32>
    %100 = tpu.matmul %98, %99, %cst_36 {dimension_numbers = #tpu.dot_dimension_numbers<[1], [0], [0], [1], [0, 0, 1, 1], [], []>} : vector<8x8xf32>, vector<8x128xf32>, vector<8x128xf32> -> vector<8x128xf32>
    %101 = arith.addf %79, %100 : vector<8x128xf32>
    %c0_37 = arith.constant 0 : index
    %c0_38 = arith.constant 0 : index
    %102 = vector.load %arg7[%c0_37, %c0_38] : memref<1x128xf32, #tpu.memory_space<vmem>>, vector<1x128xf32>
    %103 = vector.broadcast %102 : vector<1x128xf32> to vector<8x128xf32>
    %104 = arith.addf %101, %103 : vector<8x128xf32>
    %105 = vector.shape_cast %104 : vector<8x128xf32> to vector<1x8x128xf32>
    %c0_39 = arith.constant 0 : index
    %c0_40 = arith.constant 0 : index
    %c0_41 = arith.constant 0 : index
    %106 = vector.load %arg8[%c0_39, %c0_40, %c0_41] : memref<1x8x128xf32, #tpu.memory_space<vmem>>, vector<1x8x128xf32>
    tpu.vector_store %arg8[%c0_39, %c0_40, %c0_41], %105 {strides = array<i32>} : memref<1x8x128xf32, #tpu.memory_space<vmem>>, vector<1x8x128xf32>,
    return
  }
  func.func @transform_0(%arg0: i32) -> (i32, i32, i32) {
    %c0_i32 = arith.constant 0 : i32
    %c0_i32_0 = arith.constant 0 : i32
    %c0_i32_1 = arith.constant 0 : i32
    return %arg0, %c0_i32, %c0_i32_0 : i32, i32, i32
  }
  func.func @transform_1(%arg0: i32) -> (i32, i32, i32) {
    %c0_i32 = arith.constant 0 : i32
    %c0_i32_0 = arith.constant 0 : i32
    %c0_i32_1 = arith.constant 0 : i32
    return %arg0, %c0_i32, %c0_i32_0 : i32, i32, i32
  }
  func.func @transform_2(%arg0: i32) -> (i32, i32) {
    %c0_i32 = arith.constant 0 : i32
    %c0_i32_0 = arith.constant 0 : i32
    %c0_i32_1 = arith.constant 0 : i32
    return %c0_i32, %c0_i32_0 : i32, i32
  }
  func.func @transform_3(%arg0: i32) -> (i32, i32) {
    %c0_i32 = arith.constant 0 : i32
    %c0_i32_0 = arith.constant 0 : i32
    %c0_i32_1 = arith.constant 0 : i32
    return %c0_i32, %c0_i32_0 : i32, i32
  }
  func.func @transform_4(%arg0: i32) -> (i32, i32) {
    %c0_i32 = arith.constant 0 : i32
    %c0_i32_0 = arith.constant 0 : i32
    %c0_i32_1 = arith.constant 0 : i32
    return %c0_i32, %c0_i32_0 : i32, i32
  }
  func.func @transform_5(%arg0: i32) -> (i32, i32) {
    %c0_i32 = arith.constant 0 : i32
    %c0_i32_0 = arith.constant 0 : i32
    %c0_i32_1 = arith.constant 0 : i32
    return %c0_i32, %c0_i32_0 : i32, i32
  }
  func.func @transform_6(%arg0: i32) -> (i32, i32) {
    %c0_i32 = arith.constant 0 : i32
    %c0_i32_0 = arith.constant 0 : i32
    %c0_i32_1 = arith.constant 0 : i32
    return %c0_i32, %c0_i32_0 : i32, i32
  }
  func.func @transform_7(%arg0: i32) -> (i32, i32, i32) {
    %c0_i32 = arith.constant 0 : i32
    %c0_i32_0 = arith.constant 0 : i32
    %c0_i32_1 = arith.constant 0 : i32
    return %arg0, %c0_i32, %c0_i32_0 : i32, i32, i32
  }
}

</mosaic_0001>

<bundles_post_ra>
// kernel: tpu_custom_call.1
= control target key start
LH: loop header
LB: loop body
LE: loop exit
PB: predicated region body
PF: predicated region fallthrough
CT: control target
= control target key end

     0   :  { %s2781_s0 = inlined_call_operand.hbm [shape: f32[2,8,32], index: 0, kind: input, shape index: {}]   ;;  %s2782_s1 = inlined_call_operand.hbm [shape: f32[2,8,32], index: 1, kind: input, shape index: {}]   ;;  %s2783_s2 = inlined_call_operand.hbm [shape: f32[32,32], index: 2, kind: input, shape index: {}]   ;;  %s2784_s3 = inlined_call_operand.hbm [shape: f32[32,32], index: 3, kind: input, shape index: {}]   ;;  %s2785_s4 = inlined_call_operand.hbm [shape: f32[32,32], index: 4, kind: input, shape index: {}]   ;;  %s2786_s5 = inlined_call_operand.hbm [shape: f32[32,128], index: 5, kind: input, shape index: {}]   ;;  %s2787_s6 = inlined_call_operand.vmem [shape: f32[1,128], index: 6, kind: input, shape index: {}]   ;;  %s2788_s7 = inlined_call_operand.hbm [shape: f32[2,8,128], index: 7, kind: output, shape index: {}]  }
   0x1   :  { %2793 = sst [smem:[#allocation20_spill]] %s2783_s2 }
   0x2   :  { %2794 = sst [smem:[#allocation21_spill]] %s2784_s3 }
   0x3   :  { %2795 = sst [smem:[#allocation22_spill]] %s2785_s4 }
   0x4   :  { %2796 = sst [smem:[#allocation23_spill]] %s2786_s5 }
   0x5   :  { %12 = vsyncpa [#allocation3], 0 }
   0x6   :  { %14 = vsyncpa [#allocation3 + $0x1], 0 }
   0x7   :  { %15 = vsyncpa [#allocation6], 0 }
   0x8   :  { %17 = vsyncpa [#allocation6 + $0x1], 0 }
   0x9   :  { %18 = vsyncpa [#allocation9], 0 }
   0xa   :  { %19 = vsyncpa [#allocation12], 0 }
   0xb   :  { %20 = vsyncpa [#allocation4], 0 }
   0xc   :  { %22 = vsyncpa [#allocation4 + $0x1], 0  ;;  %s2350_s24 = smov 0   ;;  %s2352_s25 = smov 0  }
   0xd   :  { %s2354_s26 = smov 0   ;;  %s2356_s27 = smov 0  }
   0xe LB: > { %s2295_s28 = smov [#allocation7]   ;;  %s2371_s30 = sadd.s32 4294967295, %s2293_s27   ;;  %s2293_s27 = sphi %s2356_s27, %s2824_s27   ;;  %s2289_s26 = sphi %s2354_s26, %s2823_s26   ;;  %s2285_s25 = sphi %s2352_s25, %s2822_s25   ;;  %s2281_s24 = sphi %s2350_s24, %s2821_s24  }
   0xf   : > { %s228_s29 = sshll.u32 %s2295_s28, 4  ;;  %p1731_p0 = scmp.ge.s32.totalorder %s2293_s27, 1  ;;  %s2376_s29 = int_to_ptr.vmem [resolvable:$true] %s228_s29 }
  0x10   : > { %p2789_p1 = scmp.eq.s32.totalorder %s2371_s30, 0  ;;  %p216_p2 = scmp.lt.s32.totalorder %s2293_s27, 3 }
  0x11   : > { %s2296_s9 = smov [#allocation8]   ;;  %s2297_s12 = smov [#allocation10]  }
  0x12   : > { %p2378_p3 = pnand %p1731_p0, %p216_p2  ;;  %s241_s10 = sshll.u32 %s2296_s9, 4  ;;  %s2391_s10 = int_to_ptr.vmem [resolvable:$true] %s241_s10 }
  0x13   : > { %s254_s13 = sshll.u32 %s2297_s12, 4  ;;  %s2799_s2 = sld [smem:[#allocation20_spill]]  ;;  %s2393_s13 = int_to_ptr.vmem [resolvable:$true] %s254_s13 }
  0x14   : > { %s2797_s8 = scalar_select %p2378_p3, 1, 0 }
  0x15   : > { %p1945_p5 = pneg %p2378_p3 }
  0x17   : > { %p2387_p6 = pnand %p1945_p5, %p2789_p1 }
  0x19   : > { %s2039_s16 = scalar_lea.hbm %s2799_s2, 512  ;;  %p2403_p8 = pneg %p2387_p6 }
  0x1a   : > { %p2040_p7 = scmp.ne.s32.totalorder %s2799_s2, %s2039_s16  ;;  %p2046_p11 = scmp.lt.u32.totalorder %s2039_s16, %s2799_s2 }
  0x1c   : > { %p2042_p9 = pnand %p2403_p8, %p2040_p7 }
  0x1e   : > { %p2043_p10 = pneg %p2042_p9 }
  0x20   : > { %p2048_p12 = pnand %p2046_p11, %p2043_p10 }
  0x22   : > { %2051 = shalt.err (!%p2048_p12)
}
  0x23   : > { %s2052_s22 = scalar_lea.vmem %s2376_s29, 512  ;;  %p2060_p5 = scmp.lt.s32.totalorder %s2376_s29, %s2376_s29 }
  0x24   : > { %p2053_p13 = scmp.ne.s32.totalorder %s2376_s29, %s2052_s22  ;;  %p2061_p4 = scmp.lt.s32.totalorder %s2052_s22, %s2052_s22 }
  0x26   : > { %p2055_p0 = pnand %p2053_p13, %p2403_p8  ;;  %p2062_p7 = por %p2061_p4, %p2060_p5 }
  0x28   : > { %p2056_p2 = pneg %p2055_p0 }
  0x2a   : > { %p2063_p9 = pnand %p2062_p7, %p2056_p2 }
  0x2c   : > { %2066 = shalt.err (!%p2063_p9)
}
  0x2d   : > { %s2298_s23 = smov 128   ;;  %s2299_s28 = smov 8  }
  0x2e   : > { %1948 = dma.hbm_to_vmem [thread:$0]  (!%p2387_p6), %s2799_s2, 512, %s2376_s29, [#allocation6], %s2298_s23, %s2298_s23, %s2299_s28  }
  0x2f   : > { %s2801_s3 = sld [smem:[#allocation21_spill]] }
  0x35   : > { %s2067_s16 = scalar_lea.hbm %s2801_s3, 512 }
  0x36   : > { %p2068_p4 = scmp.ne.s32.totalorder %s2801_s3, %s2067_s16  ;;  %p2074_p12 = scmp.lt.u32.totalorder %s2067_s16, %s2801_s3 }
  0x38   : > { %p2070_p10 = pnand %p2068_p4, %p2403_p8 }
  0x3a   : > { %p2071_p11 = pneg %p2070_p10 }
  0x3c   : > { %p2076_p13 = pnand %p2074_p12, %p2071_p11 }
  0x3e   : > { %2079 = shalt.err (!%p2076_p13)
}
  0x3f   : > { %s2080_s29 = scalar_lea.vmem %s2391_s10, 512  ;;  %p2088_p7 = scmp.lt.s32.totalorder %s2391_s10, %s2391_s10 }
  0x40   : > { %p2081_p0 = scmp.ne.s32.totalorder %s2391_s10, %s2080_s29  ;;  %p2089_p9 = scmp.lt.s32.totalorder %s2080_s29, %s2080_s29 }
  0x42   : > { %p2083_p2 = pnand %p2081_p0, %p2403_p8  ;;  %p2090_p4 = por %p2089_p9, %p2088_p7 }
  0x44   : > { %p2084_p5 = pneg %p2083_p2 }
  0x46   : > { %p2091_p10 = pnand %p2090_p4, %p2084_p5 }
  0x48   : > { %2094 = shalt.err (!%p2091_p10)
}
  0x49   : > { %1951 = dma.hbm_to_vmem [thread:$0]  (!%p2387_p6), %s2801_s3, 512, %s2391_s10, [#allocation9], %s2298_s23, %s2298_s23, %s2299_s28  }
  0x4a   : > { %s2802_s4 = sld [smem:[#allocation22_spill]] }
  0x50   : > { %s2095_s15 = scalar_lea.hbm %s2802_s4, 512 }
  0x51   : > { %p2096_p11 = scmp.ne.s32.totalorder %s2802_s4, %s2095_s15  ;;  %p2102_p0 = scmp.lt.u32.totalorder %s2095_s15, %s2802_s4 }
  0x53   : > { %p2098_p12 = pnand %p2096_p11, %p2403_p8 }
  0x55   : > { %p2099_p13 = pneg %p2098_p12 }
  0x57   : > { %p2104_p2 = pnand %p2102_p0, %p2099_p13 }
  0x59   : > { %2107 = shalt.err (!%p2104_p2)
}
  0x5a   : > { %s2108_s10 = scalar_lea.vmem %s2393_s13, 512  ;;  %p2116_p4 = scmp.lt.s32.totalorder %s2393_s13, %s2393_s13 }
  0x5b   : > { %p2109_p5 = scmp.ne.s32.totalorder %s2393_s13, %s2108_s10  ;;  %p2117_p10 = scmp.lt.s32.totalorder %s2108_s10, %s2108_s10 }
  0x5d   : > { %p2111_p7 = pnand %p2109_p5, %p2403_p8  ;;  %p2118_p11 = por %p2117_p10, %p2116_p4 }
  0x5f   : > { %p2112_p9 = pneg %p2111_p7 }
  0x61   : > { %p2119_p12 = pnand %p2118_p11, %p2112_p9 }
  0x63   : > { %2122 = shalt.err (!%p2119_p12)
}
  0x64   : > { %1954 = dma.hbm_to_vmem [thread:$0]  (!%p2387_p6), %s2802_s4, 512, %s2393_s13, [#allocation9], %s2298_s23, %s2298_s23, %s2299_s28  }
  0x65   : > { %s2300_s22 = smov [#allocation11]   ;;  %s2803_s5 = sld [smem:[#allocation23_spill]] }
  0x66   : > { %s267_s9 = sshll.u32 %s2300_s22, 4  ;;  %s268_s9 = int_to_ptr.vmem [resolvable:$true] %s267_s9 }
  0x6b   : > { %s2123_s15 = scalar_lea.hbm %s2803_s5, 512 }
  0x6c   : > { %p2124_p13 = scmp.ne.s32.totalorder %s2803_s5, %s2123_s15  ;;  %p2130_p5 = scmp.lt.u32.totalorder %s2123_s15, %s2803_s5 }
  0x6e   : > { %p2126_p0 = pnand %p2124_p13, %p2403_p8 }
  0x70   : > { %p2127_p2 = pneg %p2126_p0 }
  0x72   : > { %p2132_p7 = pnand %p2130_p5, %p2127_p2 }
  0x74   : > { %2135 = shalt.err (!%p2132_p7)
}
  0x75   : > { %s2136_s13 = scalar_lea.vmem %s268_s9, 512  ;;  %p2144_p11 = scmp.lt.s32.totalorder %s268_s9, %s268_s9 }
  0x76   : > { %p2137_p9 = scmp.ne.s32.totalorder %s268_s9, %s2136_s13  ;;  %p2145_p12 = scmp.lt.s32.totalorder %s2136_s13, %s2136_s13 }
  0x78   : > { %p2139_p4 = pnand %p2137_p9, %p2403_p8  ;;  %p2146_p1 = por %p2145_p12, %p2144_p11 }
  0x7a   : > { %p2140_p10 = pneg %p2139_p4 }
  0x7c   : > { %p2147_p3 = pnand %p2146_p1, %p2140_p10 }
  0x7e   : > { %2150 = shalt.err (!%p2147_p3)
}
  0x7f   : > { %1957 = dma.hbm_to_vmem [thread:$0]  (!%p2387_p6), %s2803_s5, 512, %s268_s9, [#allocation12], %s2298_s23, %s2298_s23, %s2299_s28  }
  0x80   : > { %s1730_s11 = sadd.s32 4294967294, %s2293_s27   ;;  %s2502_s19 = sadd.s32 1, %s2293_s27  }
  0x81   : > { %s32_s29 = ssub.s32 %s2293_s27, %s2502_s19  ;;  %s35_s22 = sadd.s32 1, %s2289_s26 }
  0x82   : > { %p33_p1 = scmp.eq.s32.totalorder %s32_s29, 0  ;;  %p42_p3 = scmp.ne.s32.totalorder %s2289_s26, %s2285_s25 }
  0x83   : > { %p43_p8 = scmp.eq.s32.totalorder %s2293_s27, 0  ;;  %p48_p13 = scmp.ne.s32.totalorder %s2285_s25, %s2281_s24 }
  0x84   : > { %s2513_s12 = scalar_select %p33_p1, %s2289_s26, %s35_s22  }
  0x85   : > { %p2515_p0 = por %p43_p8, %p42_p3  ;;  %p2805_p2 = scmp.eq.s32.totalorder %s2371_s30, 0 }
  0x86   : > { %p203_p5 = scmp.eq.s32.totalorder %s2371_s30, 1  ;;  %p209_p7 = scmp.eq.s32.totalorder %s1730_s11, 1 }
  0x87   : > { %p2521_p6 = por %p2805_p2, %p48_p13  ;;  %p1973_p9 = scmp.lt.s32.totalorder %s2293_s27, 2 }
  0x88   : > { %s284_s28 = sand.u32 1, %s2289_s26   ;;  %p2528_p4 = por %p203_p5, %p42_p3 }
  0x89   : > { %s2806_s23 = scalar_select %p2521_p6, 1, 0 }
  0x8a   : > { %s2807_s9 = scalar_select %p2528_p4, 1, 0 }
  0x8b   : > { %p2532_p10 = por %p209_p7, %p48_p13  ;;  %s2536_s16 = sshll.u32 %s284_s28, 3 }
  0x8c   : > { %s1738_s17 = sshll.u32 %s2293_s27, 7  ;;  %s288_s10 = scalar_lea.vmem [#allocation2], %s2536_s16 }
  0x8d   : > { %s2808_s15 = scalar_select %p2532_p10, 1, 0 }
  0x8e   : > { %s2542_s13 = scalar_lea.hbm %s2781_s0, %s1738_s17  ;;  %s295_s21 = sshll.u32 %s288_s10, 4  ;;  %s2545_s21 = int_to_ptr.vmem [resolvable:$true] %s295_s21 }
  0x8f   : > { %p2549_p11 = pnand %p1973_p9, %p2515_p0  ;;  %s2556_s18 = scalar_lea.hbm %s2782_s1, %s1738_s17 }
  0x90   : > { %s302_s20 = sand.u32 1, %s2293_s27   ;;  %s285_s2 = scalar_lea.sflag [#allocation3], %s284_s28 }
  0x91   : > { %s2151_s3 = scalar_lea.hbm %s2542_s13, 128  ;;  %p2153_p1 = pneg %p2549_p11 }
  0x92   : > { %p2152_p12 = scmp.ne.s32.totalorder %s2542_s13, %s2151_s3  ;;  %s2156_s4 = scalar_lea.hbm %s2781_s0, 256 }
  0x93   : > { %p2157_p13 = scmp.lt.u32.totalorder %s2542_s13, %s2781_s0  ;;  %p2158_p0 = scmp.lt.u32.totalorder %s2156_s4, %s2151_s3 }
  0x94   : > { %p2154_p3 = pnand %p2153_p1, %p2152_p12  ;;  %p2160_p5 = scmp.lt.u32.totalorder %s2151_s3, %s2542_s13 }
  0x95   : > { %p2159_p2 = por %p2158_p0, %p2157_p13 }
  0x96   : > { %p2155_p8 = pneg %p2154_p3 }
  0x97   : > { %p2161_p7 = por %p2160_p5, %p2159_p2 }
  0x99   : > { %p2162_p9 = pnand %p2161_p7, %p2155_p8 }
  0x9b   : > { %2165 = shalt.err (!%p2162_p9)
}
  0x9c   : > { %s2166_s28 = scalar_lea.vmem %s2545_s21, 128  ;;  %s2301_s17 = smov [#allocation2]  }
  0x9d   : > { %p2167_p12 = scmp.ne.s32.totalorder %s2545_s21, %s2166_s28  ;;  %s2171_s22 = sshll.u32 %s2301_s17, 4  ;;  %s2172_s22 = int_to_ptr.vmem [resolvable:$false] %s2171_s22 }
  0x9e   : > { %s2173_s5 = scalar_lea.vmem %s2172_s22, 256  ;;  %p2174_p4 = scmp.lt.s32.totalorder %s2545_s21, %s2172_s22 }
  0x9f   : > { %p2169_p3 = pnand %p2167_p12, %p2153_p1  ;;  %p2175_p13 = scmp.lt.s32.totalorder %s2173_s5, %s2166_s28 }
  0xa1   : > { %p2170_p10 = pneg %p2169_p3  ;;  %p2176_p0 = por %p2175_p13, %p2174_p4 }
  0xa3   : > { %p2177_p2 = pnand %p2176_p0, %p2170_p10 }
  0xa5   : > { %2180 = shalt.err (!%p2177_p2)
}
  0xa6   : > { %1961 = dma.hbm_to_vmem [thread:$0]  (!%p2549_p11), %s2542_s13, 128, %s2545_s21, %s285_s2  }
  0xa7   : > { %s306_s3 = scalar_lea.vmem [#allocation5], %s2536_s16  ;;  %s303_s14 = scalar_lea.sflag [#allocation6], %s302_s20 }
  0xa8   : > { %s313_s4 = sshll.u32 %s306_s3, 4  ;;  %s2181_s10 = scalar_lea.hbm %s2556_s18, 128  ;;  %s314_s4 = int_to_ptr.vmem [resolvable:$true] %s313_s4 }
  0xa9   : > { %p2182_p4 = scmp.ne.s32.totalorder %s2556_s18, %s2181_s10  ;;  %s2186_s17 = scalar_lea.hbm %s2782_s1, 256 }
  0xaa   : > { %p2187_p5 = scmp.lt.u32.totalorder %s2556_s18, %s2782_s1  ;;  %p2188_p7 = scmp.lt.u32.totalorder %s2186_s17, %s2181_s10 }
  0xab   : > { %p2184_p10 = pnand %p2182_p4, %p2153_p1  ;;  %p2190_p12 = scmp.lt.u32.totalorder %s2181_s10, %s2556_s18 }
  0xac   : > { %p2189_p9 = por %p2188_p7, %p2187_p5 }
  0xad   : > { %p2185_p8 = pneg %p2184_p10 }
  0xae   : > { %p2191_p3 = por %p2190_p12, %p2189_p9 }
  0xb0   : > { %p2192_p13 = pnand %p2191_p3, %p2185_p8 }
  0xb2   : > { %2195 = shalt.err (!%p2192_p13)
}
  0xb3   : > { %s2196_s2 = scalar_lea.vmem %s314_s4, 128  ;;  %s2302_s16 = smov [#allocation5]  }
  0xb4   : > { %p2197_p0 = scmp.ne.s32.totalorder %s314_s4, %s2196_s2  ;;  %s2201_s13 = sshll.u32 %s2302_s16, 4  ;;  %s2202_s13 = int_to_ptr.vmem [resolvable:$false] %s2201_s13 }
  0xb5   : > { %s2203_s21 = scalar_lea.vmem %s2202_s13, 256  ;;  %p2204_p10 = scmp.lt.s32.totalorder %s314_s4, %s2202_s13 }
  0xb6   : > { %p2199_p2 = pnand %p2197_p0, %p2153_p1  ;;  %p2205_p6 = scmp.lt.s32.totalorder %s2203_s21, %s2196_s2 }
  0xb8   : > { %p2200_p4 = pneg %p2199_p2  ;;  %p2206_p5 = por %p2205_p6, %p2204_p10 }
  0xba   : > { %p2207_p7 = pnand %p2206_p5, %p2200_p4 }
  0xbc   : > { %2210 = shalt.err (!%p2207_p7)
}
  0xbd   : > { %1964 = dma.hbm_to_vmem [thread:$0]  (!%p2549_p11), %s2556_s18, 128, %s314_s4, %s303_s14  }
  0xbe   : > { %p2810_p8 = scmp.ne.s32.totalorder %s2797_s8, 0 }
  0xbf   : > { %s2609_s20 = sand.u32 (!%p2810_p8), 1, %s2285_s25   ;;  %p2811_p6 = scmp.ne.s32.totalorder (!%p2810_p8), %s2806_s23, 0 }
  0xc0   : > { %322 = sbr.rel (%p2810_p8) target bundleno = 2795 (0xaeb), region = 48  ;;  %s2612_s3 = sshll.u32 (!%p2810_p8), %s2609_s20, 3 }
  0xc1   : > { %s325_s10 = scalar_lea.sflag (!%p2810_p8), [#allocation3], %s2609_s20  ;;  %s328_s29 = scalar_lea.vmem (!%p2810_p8), [#allocation2], %s2612_s3 }
  0xc7   : > { %2256 = dma.done.wait (%p2811_p6), %s325_s10, 128  }
  0xc8   : > { %2258 = vsyncadd (%p2811_p6), %s325_s10, 4294967168  ;;  %s333_s8 = sand.u32 1, %s2371_s30   ;;  %s337_s18 = scalar_lea.vmem [#allocation5], %s2612_s3 }
  0xc9   : > { %s334_s11 = scalar_lea.sflag [#allocation6], %s333_s8 }
  0xca   : > { %2260 = dma.done.wait (%p2811_p6), %s334_s11, 128  }
  0xcb   : > { %2262 = vsyncadd (%p2811_p6), %s334_s11, 4294967168  ;;  %p2812_p11 = scmp.eq.s32.totalorder %s2371_s30, 0 }
  0xcd   : > { %2264 = dma.done.wait (%p2812_p11), [#allocation6], 512   ;;  %p2813_p1 = pmov %p2812_p11 }
  0xcf   : > { %2266 = vsyncadd (%p2813_p1), [#allocation6], 4294966784  ;;  %p2814_p9 = pmov %p2813_p1 }
  0xd0   : > { %p2815_p12 = pmov %p2813_p1 }
  0xd1   : > { %2268 = dma.done.wait (%p2814_p9), [#allocation9], 1024  }
  0xd2   : > { %2270 = vsyncadd (%p2815_p12), [#allocation9], 4294966272  ;;  %p2816_p3 = pmov %p2813_p1 }
  0xd3   : > { %p2817_p13 = pmov %p2813_p1 }
  0xd4   : > { %2272 = dma.done.wait (%p2816_p3), [#allocation12], 512  }
  0xd5   : > { %2274 = vsyncadd (%p2817_p13), [#allocation12], 4294966784  ;;  %v2303_v0 = vmov 0.0|0.0   ;;  %vm2304_vm0 = vmmov 0   ;;  %v2305_v1 = vmov 0.0   ;;  %v470_v2 = vld [vmem:[#allocation8] sm:$0xff] }
  0xd6   : > { %1911 = vmatprep.subr.bf16.mxu1 %v2303_v0  ;;  %1905 = vmatprep.subr.bf16.mxu0 %v2303_v0  ;;  %v471_v3 = vld [vmem:[#allocation8 + $0x8] sm:$0xff]  ;;  %v391_v4 = vld [vmem:[#allocation7] sm:$0xff]  ;;  %v472_v7 = vld [vmem:[#allocation8 + $0x10] sm:$0xff]  ;;  %vm395_vm1 = vcmask 261120   ;;  %vm625_vm2 = vcmask 64512   ;;  %s2306_s23 = smov 120  }
  0xd7   : > { %1831 = vmatprep.mubr.msk.f32.mxu1 %vm2304_vm0, %v2305_v1  ;;  %1820 = vmatprep.mubr.msk.f32.mxu0 %vm2304_vm0, %v2305_v1  ;;  %v1912_v5 = vpack.c.bf16 %v471_v3, %v470_v2  ;;  %v392_v6 = vld [vmem:[#allocation7 + $0x8] sm:$0xff]  ;;  %v473_v8 = vld [vmem:[#allocation8 + $0x18] sm:$0xff]  ;;  %v393_v10 = vld [vmem:[#allocation7 + $0x10] sm:$0xff]  ;;  %s2307_s4 = smov 112   ;;  %s2308_s14 = smov 104  }
  0xd8   : > { %v1906_v9 = vpack.c.bf16 %v392_v6, %v391_v4  ;;  %v394_v11 = vld [vmem:[#allocation7 + $0x18] sm:$0xff]  ;;  %v1915_v12 = vpack.c.bf16 %v473_v8, %v472_v7  ;;  %v389_v15 = vld [vmem:[%s328_s29] sm:$0xff]  ;;  %v549_v18 = vld [vmem:[#allocation10 + $0x10] sm:$0xff]  ;;  %s1770_s22 = sshll.u32 %s2371_s30, 7  ;;  %s388_s5 = scalar_lea.vmem [#allocation13], %s2612_s3 }
  0xd9   : > { %1913 = vmatpush3.bf16.msra.mxu1 %v1912_v5  ;;  %v1909_v13 = vpack.c.bf16 %v394_v11, %v393_v10  ;;  %v390_v14 = vld [vmem:[%s337_s18] sm:$0xff]  ;;  %v547_v16 = vld [vmem:[#allocation10] sm:$0xff]  ;;  %v548_v17 = vld [vmem:[#allocation10 + $0x8] sm:$0xff]  ;;  %s1599_s2 = sshll.u32 %s388_s5, 4  ;;  %s2737_s21 = scalar_lea.hbm %s2788_s7, %s1770_s22  ;;  %s2739_s2 = int_to_ptr.vmem [resolvable:$true] %s1599_s2 }
  0xda   : > { %1907 = vmatpush3.bf16.msra.mxu0 %v1906_v9  ;;  %1914 = vmatprep.subr.bf16.mxu1 %v2303_v0  ;;  %v1918_v19 = vpack.c.bf16 %v548_v17, %v547_v16  ;;  %v550_v20 = vld [vmem:[#allocation10 + $0x18] sm:$0xff]  ;;  %v622_v50 = vld [vmem:[#allocation11 + $0x8] sm:$0xff]  ;;  %v621_v55 = vld [vmem:[#allocation11] sm:$0xff]  ;;  %s1586_s10 = scalar_lea.sflag [#allocation4], %s2609_s20  ;;  %s2211_s29 = scalar_lea.vmem %s2739_s2, 128 }
  0xdb   : > { %1908 = vmatprep.subr.bf16.mxu0 %v2303_v0  ;;  %v1921_v21 = vpack.c.bf16 %v550_v20, %v549_v18  ;;  %v623_v18 = vld [vmem:[#allocation11 + $0x10] sm:$0xff]  ;;  %p2212_p0 = scmp.ne.s32.totalorder %s2739_s2, %s2211_s29  ;;  %p2818_p2 = scmp.ne.s32.totalorder %s2807_s9, 0 }
  0xdc   : > { %s2309_s30 = smov [#allocation13]  }
  0xdd   : > { %1916 = vmatpush3.bf16.msra.mxu1 %v1915_v12  ;;  %p2213_p4 = pnand %p2212_p0, %p2818_p2  ;;  %s2215_s3 = sshll.u32 %s2309_s30, 4  ;;  %s2216_s3 = int_to_ptr.vmem [resolvable:$false] %s2215_s3 }
  0xde   : > { %1910 = vmatpush3.bf16.msra.mxu0 %v1909_v13  ;;  %1845 = vmatprep.subr.mxu1 %v2305_v1  ;;  %s2217_s8 = scalar_lea.vmem %s2216_s3, 256  ;;  %p2218_p5 = scmp.lt.s32.totalorder %s2739_s2, %s2216_s3 }
  0xdf   : > { %1917 = vmatprep.subr.bf16.mxu0 %v2303_v0  ;;  %p2214_p10 = pneg %p2213_p4  ;;  %p2219_p7 = scmp.lt.s32.totalorder %s2217_s8, %s2211_s29 }
  0xe0   : > { %1832 = vmatmul.mubr.msk.f32.vlgmr.msra.gmra.mrb[0].mxu1 %vm395_vm1, %v390_v14 }
  0xe1   : > { %1821 = vmatmul.mubr.msk.f32.vlgmr.msra.gmra.mrb[0].mxu0 %vm395_vm1, %v389_v15  ;;  %1847 = vmatprep.mubr.msk.f32.mxu1 %vm2304_vm0, %v2305_v1  ;;  %p2220_p8 = por %p2219_p7, %p2218_p5 }
  0xe2   : > { %1842 = vmatprep.mubr.msk.f32.mxu0 %vm2304_vm0, %v2305_v1  ;;  %1919 = vmatpush3.bf16.msra.mxu0 %v1918_v19 }
  0xe3   : > { %1920 = vmatprep.subr.bf16.mxu0 %v2303_v0  ;;  %p2221_p6 = pnand %p2220_p8, %p2214_p10 }
  0xe6   : > { %1922 = vmatpush3.bf16.msra.mxu0 %v1921_v21 }
  0xe7   : > { %1855 = vmatprep.subr.mxu0 %v2305_v1 }
  0xe9   : > { %1843 = vmatmul.mubr.msk.f32.vlgmr.msra.gmra.mrb[2].mxu0 %vm395_vm1, %v390_v14 }
  0xea   : > { %1857 = vmatprep.mubr.msk.f32.mxu0 %vm2304_vm0, %v2305_v1 }
 0x1b3   : > { %v543_v22 = vpop.f32.mrb[0].mxu1 }
 0x1b4   : > { %788 = vrot.lane.b32.xlu0 %v543_v22, %s2306_s23  ;;  %v465_v23 = vpop.f32.mrb[0].mxu0  ;;  %v1833_v24 = vpop.f32.mrb[1].mxu1  ;;  %1846 = vmatpush3.xpose.msk.msra.mxu1 %vm625_vm2, %v543_v22 }
 0x1b5   : > { %v2659_v25 = vmul.f32 0.35355338, %v465_v23  ;;  %v1822_v26 = vpop.f32.mrb[1].mxu0  ;;  %1850 = vmatprep.subr.mxu1 %v2305_v1 }
 0x1b7   : > { %1848 = vmatmul.mubr.msk.f32.vlgmr.msra.gmra.mrb[2].mxu1 %vm625_vm2, %v2659_v25 }
 0x1b8   : > { %786 = vrot.lane.b32.xlu0 %v2659_v25, %s2306_s23  ;;  %1852 = vmatprep.mubr.msk.f32.mxu1 %vm2304_vm0, %v2305_v1 }
 0x1bc   : > { %v2668_v27 = vpop.f32.mrb[2].mxu0 }
 0x1bd   : > { %v1844_v28 = vpop.f32.mrb[3].mxu0  ;;  %1851 = vmatpush3.msra.mxu1 %v2668_v27 }
 0x1be   : > { %1860 = vmatprep.subr.mxu1 %v2305_v1 }
 0x226   : > { %v789_v29 = vpop.permute.xlu0 %788 }
 0x227   : > { %1856 = vmatpush3.xpose.msk.msra.mxu0 %vm625_vm2, %v789_v29 }
 0x228   : > { %1865 = vmatprep.subr.mxu0 %v2305_v1 }
 0x22a   : > { %v787_v30 = vpop.permute.xlu0 %786 }
 0x22b   : > { %1858 = vmatmul.mubr.msk.f32.vlgmr.msra.gmra.mrb[4].mxu0 %vm625_vm2, %v787_v30  ;;  %v624_v30 = vld [vmem:[#allocation11 + $0x18] sm:$0xff] }
 0x22c   : > { %1867 = vmatprep.mubr.msk.f32.mxu0 %vm2304_vm0, %v2305_v1  ;;  %1866 = vmatpush3.msra.mxu0 %v622_v50 }
 0x22d   : > { %1875 = vmatprep.subr.mxu0 %v2305_v1 }
 0x28a   : > { %v698_v31 = vpop.f32.mrb[2].mxu1 }
 0x28b   : > { %v1849_v32 = vpop.f32.mrb[3].mxu1  ;;  %v702_v33 = vsel %vm625_vm2, %v698_v31, -inf }
 0x28c   : > { %703 = vmax.xlane.f32.xlu1 %v702_v33 }
 0x2fe   : > { %v860_v34 = vpop.f32.mrb[4].mxu0 }
 0x2ff   : > { %v1859_v35 = vpop.f32.mrb[5].mxu0  ;;  %v864_v36 = vsel %vm625_vm2, %v860_v34, -inf }
 0x300   : > { %865 = vmax.xlane.f32.xlu1 %v864_v36 }
 0x319   : > { %v704_v37 = vpop.xlane.xlu1 %703 }
 0x31a   : > { %v705_v38 = vsub.f32 %v698_v31, %v704_v37 }
 0x31c   : > { %v706_v39 = vmul.f32 1.442695, %v705_v38 }
 0x31e   : > { %2023 = vpow2.f32 %v706_v39  ;;  %v1768_v39 = vld [vmem:[%s2787_s6] ss:$0 sm:$0xff] }
 0x328   : > { %v2024_v40 = vpop.eup %2023 }
 0x329   : > { %v708_v41 = vsel %vm625_vm2, %v2024_v40, 0.0 }
 0x32a   : > { %709 = vadd.xlane.f32.xlu0 %v708_v41 }
 0x340   : > { %1187 = vrot.lane.b32.xlu0 %v2668_v27, %s2307_s4 }
 0x344   : > { %1339 = vrot.lane.b32.xlu0 %v543_v22, %s2308_s14 }
 0x38d   : > { %v866_v42 = vpop.xlane.xlu1 %865 }
 0x38e   : > { %v867_v43 = vsub.f32 %v860_v34, %v866_v42 }
 0x390   : > { %v868_v44 = vmul.f32 1.442695, %v867_v43 }
 0x392   : > { %2025 = vpow2.f32 %v868_v44 }
 0x39c   : > { %v2026_v45 = vpop.eup %2025 }
 0x39d   : > { %v870_v46 = vsel %vm625_vm2, %v2026_v45, 0.0 }
 0x39e   : > { %871 = vadd.xlane.f32.xlu1 %v870_v46 }
 0x3af   : > { %876 = vrot.lane.b32.xlu1 %v2668_v27, %s2306_s23 }
 0x3b3   : > { %1100 = vrot.lane.b32.xlu1 %v543_v22, %s2307_s4 }
 0x3b7   : > { %v710_v47 = vpop.xlane.xlu0 %709  ;;  %1098 = vrot.lane.b32.xlu1 %v2659_v25, %s2307_s4 }
 0x3b8   : > { %2027 = vrcp.f32 %v710_v47 }
 0x3bb   : > { %v1188_v57 = vpop.permute.xlu0 %1187 }
 0x3bf   : > { %v1340_v13 = vpop.permute.xlu0 %1339 }
 0x3c2   : > { %v2028_v48 = vpop.eup %2027 }
 0x3c3   : > { %v712_v49 = vmul.f32 %v2028_v48, %v2024_v40 }
 0x3c5   : > { %1853 = vmatmul.mubr.msk.f32.vlgmr.msra.gmra.mrb[4].mxu1 %vm625_vm2, %v712_v49 }
 0x3c6   : > { %1862 = vmatprep.mubr.msk.f32.mxu1 %vm2304_vm0, %v2305_v1 }
 0x42b   : > { %v872_v51 = vpop.xlane.xlu1 %871 }
 0x42c   : > { %2029 = vrcp.f32 %v872_v51 }
 0x42f   : > { %v877_v52 = vpop.permute.xlu1 %876 }
 0x430   : > { %1861 = vmatpush3.msra.mxu1 %v877_v52 }
 0x431   : > { %1870 = vmatprep.subr.mxu1 %v2305_v1 }
 0x433   : > { %v1101_v59 = vpop.permute.xlu1 %1100 }
 0x436   : > { %v2030_v53 = vpop.eup %2029 }
 0x437   : > { %v874_v54 = vmul.f32 %v2030_v53, %v2026_v45  ;;  %v1099_v62 = vpop.permute.xlu1 %1098 }
 0x439   : > { %1863 = vmatmul.mubr.msk.f32.vlgmr.msra.gmra.mrb[6].mxu1 %vm625_vm2, %v874_v54 }
 0x43a   : > { %1871 = vmatpush3.msra.mxu1 %v621_v55  ;;  %1872 = vmatprep.mubr.msk.f32.mxu1 %vm2304_vm0, %v2305_v1 }
 0x43b   : > { %1880 = vmatprep.subr.mxu1 %v2305_v1 }
 0x498   : > { %v782_v56 = vpop.f32.mrb[4].mxu1 }
 0x499   : > { %v1854_v58 = vpop.f32.mrb[5].mxu1  ;;  %1873 = vmatmul.mubr.msk.f32.vlgmr.msra.gmra.mrb[8].mxu1 %vm625_vm2, %v782_v56 }
 0x49a   : > { %1881 = vmatpush3.msra.mxu1 %v1188_v57  ;;  %1882 = vmatprep.mubr.msk.f32.mxu1 %vm2304_vm0, %v2305_v1 }
 0x49b   : > { %1890 = vmatprep.subr.mxu1 %v2305_v1 }
 0x50c   : > { %v948_v60 = vpop.f32.mrb[6].mxu1 }
 0x50d   : > { %v1864_v61 = vpop.f32.mrb[7].mxu1  ;;  %1868 = vmatmul.mubr.msk.f32.vlgmr.msra.gmra.mrb[6].mxu0 %vm625_vm2, %v948_v60 }
 0x50e   : > { %1876 = vmatpush3.xpose.msk.msra.mxu0 %vm625_vm2, %v1101_v59  ;;  %1877 = vmatprep.mubr.msk.f32.mxu0 %vm2304_vm0, %v2305_v1 }
 0x50f   : > { %1885 = vmatprep.subr.mxu0 %v2305_v1 }
 0x511   : > { %1878 = vmatmul.mubr.msk.f32.vlgmr.msra.gmra.mrb[8].mxu0 %vm625_vm2, %v1099_v62 }
 0x512   : > { %1887 = vmatprep.mubr.msk.f32.mxu0 %vm2304_vm0, %v2305_v1  ;;  %1886 = vmatpush3.msra.mxu0 %v623_v18 }
 0x513   : > { %1895 = vmatprep.subr.mxu0 %v2305_v1 }
 0x56c   : > { %v1094_v63 = vpop.f32.mrb[8].mxu1 }
 0x56d   : > { %v1874_v0 = vpop.f32.mrb[9].mxu1 }
 0x5e0   : > { %v1021_v2 = vpop.f32.mrb[6].mxu0 }
 0x5e1   : > { %v1095_v3 = vadd.f32 %v1094_v63, %v1021_v2  ;;  %v1869_v4 = vpop.f32.mrb[7].mxu0 }
 0x5e4   : > { %v1172_v5 = vpop.f32.mrb[8].mxu0 }
 0x5e5   : > { %v1879_v6 = vpop.f32.mrb[9].mxu0  ;;  %v1176_v7 = vsel %vm625_vm2, %v1172_v5, -inf }
 0x5e6   : > { %1177 = vmax.xlane.f32.xlu1 %v1176_v7 }
 0x673   : > { %v1178_v8 = vpop.xlane.xlu1 %1177 }
 0x674   : > { %v1179_v9 = vsub.f32 %v1172_v5, %v1178_v8 }
 0x676   : > { %v1180_v10 = vmul.f32 1.442695, %v1179_v9 }
 0x678   : > { %2031 = vpow2.f32 %v1180_v10 }
 0x682   : > { %v2032_v11 = vpop.eup %2031 }
 0x683   : > { %v1182_v12 = vsel %vm625_vm2, %v2032_v11, 0.0 }
 0x684   : > { %1183 = vadd.xlane.f32.xlu0 %v1182_v12 }
 0x69a   : > { %1337 = vrot.lane.b32.xlu0 %v2659_v25, %s2308_s14 }
 0x711   : > { %v1184_v14 = vpop.xlane.xlu0 %1183 }
 0x712   : > { %2033 = vrcp.f32 %v1184_v14 }
 0x715   : > { %v1338_v17 = vpop.permute.xlu0 %1337 }
 0x71c   : > { %v2034_v15 = vpop.eup %2033 }
 0x71d   : > { %v1186_v16 = vmul.f32 %v2034_v15, %v2032_v11 }
 0x71f   : > { %1883 = vmatmul.mubr.msk.f32.vlgmr.msra.gmra.mrb[10].mxu1 %vm625_vm2, %v1186_v16 }
 0x720   : > { %1891 = vmatpush3.xpose.msk.msra.mxu1 %vm625_vm2, %v1340_v13  ;;  %1892 = vmatprep.mubr.msk.f32.mxu1 %vm2304_vm0, %v2305_v1 }
 0x721   : > { %1900 = vmatprep.subr.mxu1 %v2305_v1 }
 0x723   : > { %1893 = vmatmul.mubr.msk.f32.vlgmr.msra.gmra.mrb[12].mxu1 %vm625_vm2, %v1338_v17 }
 0x724   : > { %1902 = vmatprep.mubr.msk.f32.mxu1 %vm2304_vm0, %v2305_v1  ;;  %1901 = vmatpush3.msra.mxu1 %v624_v30 }
 0x7f2   : > { %v1259_v19 = vpop.f32.mrb[10].mxu1 }
 0x7f3   : > { %v1884_v20 = vpop.f32.mrb[11].mxu1  ;;  %1888 = vmatmul.mubr.msk.f32.vlgmr.msra.gmra.mrb[10].mxu0 %vm625_vm2, %v1259_v19 }
 0x7f4   : > { %1897 = vmatprep.mubr.msk.f32.mxu0 %vm2304_vm0, %v2305_v1 }
 0x7f6   : > { %v1411_v21 = vpop.f32.mrb[12].mxu1 }
 0x7f7   : > { %v1894_v22 = vpop.f32.mrb[13].mxu1  ;;  %v1415_v23 = vsel %vm625_vm2, %v1411_v21, -inf }
 0x7f8   : > { %1416 = vmax.xlane.f32.xlu0 %v1415_v23 }
 0x885   : > { %v1417_v24 = vpop.xlane.xlu0 %1416 }
 0x886   : > { %v1418_v25 = vsub.f32 %v1411_v21, %v1417_v24 }
 0x888   : > { %v1419_v26 = vmul.f32 1.442695, %v1418_v25 }
 0x88a   : > { %2035 = vpow2.f32 %v1419_v26 }
 0x894   : > { %v2036_v28 = vpop.eup %2035 }
 0x895   : > { %v1421_v29 = vsel %vm625_vm2, %v2036_v28, 0.0 }
 0x896   : > { %1422 = vadd.xlane.f32.xlu1 %v1421_v29 }
 0x8a7   : > { %1426 = vrot.lane.b32.xlu1 %v2668_v27, %s2308_s14 }
 0x8c6   : > { %v1332_v1 = vpop.f32.mrb[10].mxu0 }
 0x8c7   : > { %v1336_v31 = vadd.f32 %v1332_v1, %v1095_v3  ;;  %v1889_v32 = vpop.f32.mrb[11].mxu0 }
 0x923   : > { %v1423_v33 = vpop.xlane.xlu1 %1422 }
 0x924   : > { %2037 = vrcp.f32 %v1423_v33 }
 0x927   : > { %v1427_v34 = vpop.permute.xlu1 %1426 }
 0x928   : > { %1896 = vmatpush3.msra.mxu0 %v1427_v34 }
 0x92e   : > { %v2038_v35 = vpop.eup %2037 }
 0x92f   : > { %v1425_v36 = vmul.f32 %v2038_v35, %v2036_v28 }
 0x931   : > { %1898 = vmatmul.mubr.msk.f32.vlgmr.msra.gmra.mrb[12].mxu0 %vm625_vm2, %v1425_v36 }
 0xa04   : > { %v1498_v37 = vpop.f32.mrb[12].mxu0 }
 0xa05   : > { %v1899_v38 = vpop.f32.mrb[13].mxu0  ;;  %1903 = vmatmul.mubr.msk.f32.vlgmr.msra.gmra.mrb[14].mxu1 %vm625_vm2, %v1498_v37 }
 0xad8   : > { %v1571_v27 = vpop.f32.mrb[14].mxu1 }
 0xad9   : > { %v1575_v40 = vadd.f32 %v1571_v27, %v1336_v31  ;;  %v1904_v41 = vpop.f32.mrb[15].mxu1 }
 0xadb   : > { %v1583_v42 = vadd.f32 %v1768_v39, %v1575_v40 }
 0xadd   : > { %1584 = vst [vmem:[%s388_s5] sm:$0xff] %v1583_v42 }
 0xade   : > { %2224 = shalt.err (!%p2221_p6)
}
 0xadf   : > { %s2225_s20 = scalar_lea.hbm %s2737_s21, 128  ;;  %s2229_s23 = scalar_lea.hbm %s2788_s7, 256 }
 0xae0   : > { %p2226_p11 = scmp.ne.s32.totalorder %s2737_s21, %s2225_s20  ;;  %p2230_p12 = scmp.lt.u32.totalorder %s2737_s21, %s2788_s7 }
 0xae1   : > { %p2231_p3 = scmp.lt.u32.totalorder %s2229_s23, %s2225_s20  ;;  %p2233_p0 = scmp.lt.u32.totalorder %s2225_s20, %s2737_s21 }
 0xae2   : > { %p2227_p1 = pnand %p2226_p11, %p2818_p2 }
 0xae3   : > { %p2232_p13 = por %p2231_p3, %p2230_p12 }
 0xae4   : > { %p2228_p9 = pneg %p2227_p1 }
 0xae5   : > { %p2234_p4 = por %p2233_p0, %p2232_p13 }
 0xae7   : > { %p2235_p10 = pnand %p2234_p4, %p2228_p9 }
 0xae9   : > { %2238 = shalt.err (!%p2235_p10)
}
 0xaea   : > { %1943 = dma.vmem_to_hbm [thread:$0]  (%p2818_p2), %s2739_s2, 128, %s2737_s21, %s1586_s10  }
 0xaeb PF: > { %s1611_s28 = sand.u32 1, %s2281_s24   ;;  %p2819_p5 = scmp.ne.s32.totalorder %s2808_s15, 0 }
 0xaec   : > { %p2820_p7 = scmp.ge.s32.totalorder %s2293_s27, 2  ;;  %s1612_s17 = scalar_lea.sflag [#allocation4], %s1611_s28 }
 0xaee   : > { %p1966_p8 = pnand %p2820_p7, %p2819_p5 }
 0xaf0   : > { %2276 = dma.done.wait (!%p1966_p8), %s1612_s17, 128  }
 0xaf1   : > { %2278 = vsyncadd (!%p1966_p8), %s1612_s17, 4294967168  ;;  %p25_p6 = scmp.ge.s32.totalorder %s2502_s19, 4   ;;  %s2821_s24 = smov %s2285_s25 }
 0xaf2   : > { %s2822_s25 = smov %s2289_s26  ;;  %s2823_s26 = smov %s2513_s12 }
 0xaf3   : > { %s2824_s27 = smov %s2502_s19  ;;  %27 = sbr.rel (!%p25_p6) target bundleno = 14 (0xe), region = 122 }
 0xafa   :  { %1617 = vsyncpa [#allocation3], 1 }
 0xafb   :  { %1619 = vsyncpa [#allocation3 + $0x1], 1 }
 0xafc   :  { %1620 = vsyncpa [#allocation6], 1 }
 0xafd   :  { %1622 = vsyncpa [#allocation6 + $0x1], 1 }
 0xafe   :  { %1623 = vsyncpa [#allocation9], 1 }
 0xaff   :  { %1624 = vsyncpa [#allocation12], 1 }
 0xb00   :  { %1625 = vsyncpa [#allocation4], 1 }
 0xb01   :  { %1627 = vsyncpa [#allocation4 + $0x1], 1 }

</bundles_post_ra>
